<compile_context>
chip_gen: v5e
topology: v5e:2x2
jax: 0.10.0
libtpu: 0.0.40
codegen_flags: <defaults>
</compile_context>

<pallas_src>
import functools

import jax
import jax.numpy as jnp
from jax.experimental import pallas as pl
from jax.experimental.pallas import tpu as pltpu


def _cbam_kernel(fc1_ref, fc2_ref, wmax_ref, wavg_ref, negpad_ref, x_ref, o_ref,
                 *, W, HW, K, PAD, PADDED):
    Bt = x_ref.shape[0]          # static batch-tile size
    C = x_ref.shape[1]
    HWp = x_ref.shape[2]         # lane-padded H*W (multiple of 128)
    EDGE = PAD * W + PAD         # max |flat shift| for the KxK conv

    # ---------------- channel attention: spatial max / mean pooling ----------------
    # One batch element at a time; each (C, HWp) f32 view feeds its two lane
    # reductions and dies (no cached per-batch copies -> no vreg spills).
    max_cols, avg_cols = [], []
    for b in range(Bt):                                        # static unroll (Bt small)
        xb = x_ref[b].astype(jnp.float32)                      # (C, HWp)
        if PADDED:
            mx_src = xb + negpad_ref[...]                      # -1e30 on padded lanes
        else:
            mx_src = xb
        max_cols.append(jnp.max(mx_src, axis=1, keepdims=True))                    # (C, 1)
        avg_cols.append(jnp.sum(xb, axis=1, keepdims=True) * (1.0 / float(HW)))    # (C, 1)
    pooled = jnp.concatenate(max_cols + avg_cols, axis=1)       # (C, 2*Bt)

    # Shared MLP, both pooling branches and all batch elements fused in one pair
    # of small matmuls.
    h = jnp.dot(fc1_ref[...], pooled, preferred_element_type=jnp.float32)   # (hidden, 2*Bt)
    h = jnp.maximum(h, 0.0)                                                  # ReLU
    mlp = jnp.dot(fc2_ref[...], h, preferred_element_type=jnp.float32)       # (C, 2*Bt)
    caT = jax.nn.sigmoid(mlp[:, :Bt] + mlp[:, Bt:])                          # (C, Bt)
    # TODO(synk): a (2*Bt, C)-row MLP orientation would fill the MXU lane dim for
    # large C, but needs in-kernel transposes of sub-(8,128) tiles; the MLP is a
    # negligible fraction of the kernel's work, so the proven column layout stays.

    # ---------------- spatial attention pools (channel max / mean of x*ca) ---------
    inv_c = 1.0 / float(C)
    mx_rows, av_rows = [], []
    for b in range(Bt):
        xcb = x_ref[b].astype(jnp.float32) * caT[:, b:b + 1]    # (C, HWp), dies after reductions
        mx_rows.append(jnp.max(xcb, axis=0, keepdims=True))     # (1, HWp)
        av_rows.append(jnp.sum(xcb, axis=0, keepdims=True) * inv_c)
    mx = jnp.concatenate(mx_rows, axis=0)                       # (Bt, HWp)
    av = jnp.concatenate(av_rows, axis=0)                       # (Bt, HWp)

    # ---------------- KxK spatial conv, vreg-resident ----------------
    # Zero-pad once along the lane axis; every tap is two vector FMAs against a
    # pre-masked per-tap weight row loaded from VMEM.
    zpad = jnp.zeros((Bt, EDGE), jnp.float32)
    mxp = jnp.concatenate([zpad, mx, zpad], axis=1)             # (Bt, HWp + 2*EDGE)
    avp = jnp.concatenate([zpad, av, zpad], axis=1)
    wm = wmax_ref[...]                                          # (K*K, HWp) masked weights
    wa = wavg_ref[...]                                          # (K*K, HWp)
    # TODO(synk): pltpu.roll per tap would move the lane shifts onto the XLU; kept
    # as static slices of the zero-padded map to stay on verified shift semantics.

    conv = jnp.zeros((Bt, HWp), jnp.float32)
    t = 0
    for di in range(K):                                         # static unrolled KxK loop
        dy = di - PAD
        for dj in range(K):
            dx = dj - PAD
            off = EDGE + dy * W + dx                            # static lane offset
            conv = (conv
                    + wm[t:t + 1, :] * mxp[:, off:off + HWp]
                    + wa[t:t + 1, :] * avp[:, off:off + HWp])
            t += 1
    sa = jax.nn.sigmoid(conv)                                   # (Bt, HWp)

    # ---------------- fused output scale (recompute, don't cache) ----------------
    for b in range(Bt):
        o_ref[b] = (x_ref[b].astype(jnp.float32)
                    * caT[:, b:b + 1]
                    * sa[b:b + 1, :]).astype(o_ref.dtype)       # lane-dense store


def cbam_forward(x, fc1_w, fc2_w, conv_w, *, b_tile=None, io_dtype=None):
    """x: (B, C, H, W). fc1_w: (C//r, C). fc2_w: (C, C//r). conv_w: (1, 2, K, K).

    io_dtype: optional reduced-precision kernel I/O dtype (e.g. jnp.bfloat16) —
    the kernel is HBM-bound, so bf16 I/O is ~2x on v5e/v6e; compute stays f32.
    """
    B, C, H, W = x.shape
    HW = H * W
    HWp = max(128, ((HW + 127) // 128) * 128)       # lane-dense padded spatial size
    PADDED = HWp != HW
    hidden = fc1_w.shape[0]
    K = conv_w.shape[-1]
    PAD = (K - 1) // 2
    io_dt = jnp.dtype(io_dtype) if io_dtype is not None else jnp.dtype(x.dtype)

    # ---- lane-dense (B, C, HWp) layout, zero-padded spatial tail ----
    x_flat = x.reshape(B, C, HW)
    if PADDED:
        x_flat = jnp.concatenate(
            [x_flat, jnp.zeros((B, C, HWp - HW), x_flat.dtype)], axis=2)
    x_flat = x_flat.astype(io_dt)

    fc1 = fc1_w.astype(jnp.float32)                 # (hidden, C), VMEM resident
    fc2 = fc2_w.astype(jnp.float32)                 # (C, hidden), VMEM resident

    # ---- pre-masked per-tap conv weight rows (weight * validity mask) ----
    lane = jnp.arange(HWp, dtype=jnp.int32)
    yy, xx = lane // W, lane % W
    wmax_rows, wavg_rows = [], []
    for di in range(K):
        dy = di - PAD
        for dj in range(K):
            dx = dj - PAD
            valid = ((lane < HW)
                     & (yy + dy >= 0) & (yy + dy < H)
                     & (xx + dx >= 0) & (xx + dx < W)).astype(jnp.float32)
            wmax_rows.append(valid * conv_w[0, 0, di, dj])
            wavg_rows.append(valid * conv_w[0, 1, di, dj])
    wmax = jnp.stack(wmax_rows).astype(jnp.float32)             # (K*K, HWp)
    wavg = jnp.stack(wavg_rows).astype(jnp.float32)             # (K*K, HWp)
    negpad = jnp.where(lane < HW, 0.0, -1e30).astype(jnp.float32).reshape(1, HWp)

    # ---- batch-tile sizing: 2x(in) + 2x(out) double buffers + f32 working set ----
    itemsize = io_dt.itemsize
    per_b = (4 * C * HWp * itemsize      # double-buffered input + output blocks
             + 3 * C * HWp * 4           # transient (C, HWp) f32 views per phase
             + 16 * HWp * 4)             # (b, HWp) f32 maps (mx/av/conv/sa, padded maps)
    weights_bytes = 2 * (2 * C * hidden * 4 + (2 * K * K + 1) * HWp * 4)
    budget = 24 * 1024 * 1024            # fits v7x's 64 MiB/TC VMEM with headroom
    if b_tile is None:
        b_tile = max(1, min(B, (budget - weights_bytes) // max(per_b, 1), 8))
        # Keep >= min(B, 4) grid steps: both v7x TensorCores get work and the
        # input/output DMA pipeline overlaps across steps (B=2 -> grid=(2,)).
        b_tile = min(b_tile, max(1, B // min(B, 4)))
        while B % b_tile:
            b_tile -= 1

    vmem_needed = b_tile * per_b + weights_bytes + (2 << 20)
    vmem_limit = int(min(64 << 20, max(32 << 20, int(vmem_needed * 1.25))))

    kernel = functools.partial(_cbam_kernel, W=W, HW=HW, K=K, PAD=PAD, PADDED=PADDED)

    out_flat = pl.pallas_call(
        kernel,
        out_shape=jax.ShapeDtypeStruct((B, C, HWp), io_dt),
        grid_spec=pltpu.PrefetchScalarGridSpec(
            num_scalar_prefetch=0,
            grid=(B // b_tile,),
            in_specs=[
                pl.BlockSpec((hidden, C), lambda b: (0, 0)),          # fc1 (resident)
                pl.BlockSpec((C, hidden), lambda b: (0, 0)),          # fc2 (resident)
                pl.BlockSpec((K * K, HWp), lambda b: (0, 0)),         # masked max-weights
                pl.BlockSpec((K * K, HWp), lambda b: (0, 0)),         # masked avg-weights
                pl.BlockSpec((1, HWp), lambda b: (0, 0)),             # pad-lane -inf mask
                pl.BlockSpec((b_tile, C, HWp), lambda b: (b, 0, 0)),  # x
            ],
            out_specs=pl.BlockSpec((b_tile, C, HWp), lambda b: (b, 0, 0)),
        ),
        compiler_params=pltpu.CompilerParams(
            dimension_semantics=("parallel",),      # batch tiles are independent
            vmem_limit_bytes=vmem_limit,
        ),
    )(fc1, fc2, wmax, wavg, negpad, x_flat)

    return out_flat[:, :, :HW].reshape(B, C, H, W)


def cbam_reference(x, fc1_w, fc2_w, conv_w):
    """Pure-JAX reference matching the (bug-fixed) PyTorch module semantics."""
    maxp = jnp.max(x, axis=(2, 3))    # (B, C)
    avgp = jnp.mean(x, axis=(2, 3))   # (B, C)

    def mlp(p):
        return jnp.maximum(p @ fc1_w.T, 0.0) @ fc2_w.T

    ca = jax.nn.sigmoid(mlp(maxp) + mlp(avgp))[:, :, None, None]
    xc = x * ca
    mx = jnp.max(xc, axis=1, keepdims=True)
    av = jnp.mean(xc, axis=1, keepdims=True)
    pooled = jnp.concatenate([mx, av], axis=1)  # (B, 2, H, W)
    pad = (conv_w.shape[-1] - 1) // 2
    conv = jax.lax.conv_general_dilated(
        pooled, conv_w, window_strides=(1, 1), padding=[(pad, pad), (pad, pad)],
        dimension_numbers=("NCHW", "OIHW", "NCHW"))
    sa = jax.nn.sigmoid(conv)
    return xc * sa


if __name__ == "__main__":
    # Small shapes consistent with CBAM(channel=32, ratio=16, kernel_size=3).
    B, C, H, W = 2, 32, 16, 16
    ratio, K = 16, 3
    hidden = C // ratio

    key = jax.random.PRNGKey(0)
    kx, k1, k2, k3 = jax.random.split(key, 4)
    x = jax.random.normal(kx, (B, C, H, W), dtype=jnp.float32)
    fc1_w = 0.1 * jax.random.normal(k1, (hidden, C), dtype=jnp.float32)   # Linear(C, C//r, bias=False)
    fc2_w = 0.1 * jax.random.normal(k2, (C, hidden), dtype=jnp.float32)   # Linear(C//r, C, bias=False)
    conv_w = 0.1 * jax.random.normal(k3, (1, 2, K, K), dtype=jnp.float32)  # Conv2d(2, 1, 3, pad=1, bias=False)

    out = jax.block_until_ready(cbam_forward(x, fc1_w, fc2_w, conv_w))
    ref = cbam_reference(x, fc1_w, fc2_w, conv_w)
    assert out.shape == (B, C, H, W)
    assert jnp.allclose(out, ref, atol=1e-5, rtol=1e-5), float(jnp.max(jnp.abs(out - ref)))
    print("KERNEL_OK")
</pallas_src>

<mosaic_0001>
module attributes {stable_mosaic.version = 11 : i64} {
  func.func @_cbam_kernel(%arg0: i32, %arg1: memref<2x32xf32, #tpu.memory_space<vmem>>, %arg2: memref<32x2xf32, #tpu.memory_space<vmem>>, %arg3: memref<9x256xf32, #tpu.memory_space<vmem>>, %arg4: memref<9x256xf32, #tpu.memory_space<vmem>>, %arg5: memref<1x256xf32, #tpu.memory_space<vmem>>, %arg6: memref<1x32x256xf32, #tpu.memory_space<vmem>>, %arg7: memref<1x32x256xf32, #tpu.memory_space<vmem>>) attributes {dimension_semantics = [#tpu.dimension_semantics<parallel>], iteration_bounds = array<i64: 2>, scalar_prefetch = 0 : i64, scratch_operands = 0 : i64, tpu.core_type = #tpu.core_type<tc>, window_params = [{pipeline_mode = #tpu.pipeline_mode<synchronous>, transform_indices = @transform_0, window_bounds = array<i64: 2, 32>}, {pipeline_mode = #tpu.pipeline_mode<synchronous>, transform_indices = @transform_1, window_bounds = array<i64: 32, 2>}, {pipeline_mode = #tpu.pipeline_mode<synchronous>, transform_indices = @transform_2, window_bounds = array<i64: 9, 256>}, {pipeline_mode = #tpu.pipeline_mode<synchronous>, transform_indices = @transform_3, window_bounds = array<i64: 9, 256>}, {pipeline_mode = #tpu.pipeline_mode<synchronous>, transform_indices = @transform_4, window_bounds = array<i64: 1, 256>}, {transform_indices = @transform_5, window_bounds = array<i64: 1, 32, 256>}, {transform_indices = @transform_6, window_bounds = array<i64: 1, 32, 256>}]} {
    %c0 = arith.constant 0 : index
    %c0_0 = arith.constant 0 : index
    %c0_1 = arith.constant 0 : index
    %0 = vector.load %arg6[%c0, %c0_0, %c0_1] : memref<1x32x256xf32, #tpu.memory_space<vmem>>, vector<1x32x256xf32>
    %1 = vector.shape_cast %0 : vector<1x32x256xf32> to vector<32x256xf32>
    %cst = arith.constant dense<0xFF800000> : vector<32xf32>
    %2 = vector.multi_reduction <maximumf>, %1, %cst [1] : vector<32x256xf32> to vector<32xf32>
    %3 = vector.shape_cast %2 : vector<32xf32> to vector<32x1xf32>
    %cst_2 = arith.constant dense<0.000000e+00> : vector<32xf32>
    %4 = vector.multi_reduction <add>, %1, %cst_2 [1] : vector<32x256xf32> to vector<32xf32>
    %5 = vector.shape_cast %4 : vector<32xf32> to vector<32x1xf32>
    %cst_3 = arith.constant 3.906250e-03 : f32
    %6 = vector.broadcast %cst_3 : f32 to vector<32x1xf32>
    %7 = arith.mulf %5, %6 : vector<32x1xf32>
    %8 = tpu.concatenate %3, %7 in 1 : vector<32x1xf32>, vector<32x1xf32> -> vector<32x2xf32>
    %c0_4 = arith.constant 0 : index
    %c0_5 = arith.constant 0 : index
    %9 = vector.load %arg1[%c0_4, %c0_5] : memref<2x32xf32, #tpu.memory_space<vmem>>, vector<2x32xf32>
    %cst_6 = arith.constant dense<0.000000e+00> : vector<2x2xf32>
    %10 = tpu.matmul %9, %8, %cst_6 {dimension_numbers = #tpu.dot_dimension_numbers<[1], [0], [0], [1], [0, 0, 1, 1], [], []>} : vector<2x32xf32>, vector<32x2xf32>, vector<2x2xf32> -> vector<2x2xf32>
    %cst_7 = arith.constant 0.000000e+00 : f32
    %11 = vector.broadcast %cst_7 : f32 to vector<2x2xf32>
    %12 = arith.maximumf %10, %11 : vector<2x2xf32>
    %c0_8 = arith.constant 0 : index
    %c0_9 = arith.constant 0 : index
    %13 = vector.load %arg2[%c0_8, %c0_9] : memref<32x2xf32, #tpu.memory_space<vmem>>, vector<32x2xf32>
    %cst_10 = arith.constant dense<0.000000e+00> : vector<32x2xf32>
    %14 = tpu.matmul %13, %12, %cst_10 {dimension_numbers = #tpu.dot_dimension_numbers<[1], [0], [0], [1], [0, 0, 1, 1], [], []>} : vector<32x2xf32>, vector<2x2xf32>, vector<32x2xf32> -> vector<32x2xf32>
    %15 = vector.extract_strided_slice %14 {offsets = [0, 0], sizes = [32, 1], strides = [1, 1]} : vector<32x2xf32> to vector<32x1xf32>
    %16 = vector.extract_strided_slice %14 {offsets = [0, 1], sizes = [32, 1], strides = [1, 1]} : vector<32x2xf32> to vector<32x1xf32>
    %17 = arith.addf %15, %16 : vector<32x1xf32>
    %18 = arith.negf %17 : vector<32x1xf32>
    %19 = math.exp %18 : vector<32x1xf32>
    %cst_11 = arith.constant 1.000000e+00 : f32
    %20 = vector.broadcast %cst_11 : f32 to vector<32x1xf32>
    %21 = arith.addf %20, %19 : vector<32x1xf32>
    %22 = arith.divf %20, %21 : vector<32x1xf32>
    %c0_12 = arith.constant 0 : index
    %c0_13 = arith.constant 0 : index
    %c0_14 = arith.constant 0 : index
    %23 = vector.load %arg6[%c0_12, %c0_13, %c0_14] : memref<1x32x256xf32, #tpu.memory_space<vmem>>, vector<1x32x256xf32>
    %24 = vector.shape_cast %23 : vector<1x32x256xf32> to vector<32x256xf32>
    %25 = vector.broadcast %22 : vector<32x1xf32> to vector<32x256xf32>
    %26 = arith.mulf %24, %25 : vector<32x256xf32>
    %cst_15 = arith.constant dense<0xFF800000> : vector<256xf32>
    %27 = vector.multi_reduction <maximumf>, %26, %cst_15 [0] : vector<32x256xf32> to vector<256xf32>
    %28 = vector.shape_cast %27 : vector<256xf32> to vector<1x256xf32>
    %cst_16 = arith.constant dense<0.000000e+00> : vector<256xf32>
    %29 = vector.multi_reduction <add>, %26, %cst_16 [0] : vector<32x256xf32> to vector<256xf32>
    %30 = vector.shape_cast %29 : vector<256xf32> to vector<1x256xf32>
    %cst_17 = arith.constant 3.125000e-02 : f32
    %31 = vector.broadcast %cst_17 : f32 to vector<1x256xf32>
    %32 = arith.mulf %30, %31 : vector<1x256xf32>
    %cst_18 = arith.constant 0.000000e+00 : f32
    %33 = vector.broadcast %cst_18 : f32 to vector<1x17xf32>
    %34 = tpu.concatenate %33, %28, %33 in 1 : vector<1x17xf32>, vector<1x256xf32>, vector<1x17xf32> -> vector<1x290xf32>
    %35 = tpu.concatenate %33, %32, %33 in 1 : vector<1x17xf32>, vector<1x256xf32>, vector<1x17xf32> -> vector<1x290xf32>
    %c0_19 = arith.constant 0 : index
    %c0_20 = arith.constant 0 : index
    %36 = vector.load %arg3[%c0_19, %c0_20] : memref<9x256xf32, #tpu.memory_space<vmem>>, vector<9x256xf32>
    %c0_21 = arith.constant 0 : index
    %c0_22 = arith.constant 0 : index
    %37 = vector.load %arg4[%c0_21, %c0_22] : memref<9x256xf32, #tpu.memory_space<vmem>>, vector<9x256xf32>
    %cst_23 = arith.constant 0.000000e+00 : f32
    %38 = vector.broadcast %cst_23 : f32 to vector<1x256xf32>
    %39 = vector.extract_strided_slice %36 {offsets = [0, 0], sizes = [1, 256], strides = [1, 1]} : vector<9x256xf32> to vector<1x256xf32>
    %40 = vector.extract_strided_slice %34 {offsets = [0, 0], sizes = [1, 256], strides = [1, 1]} : vector<1x290xf32> to vector<1x256xf32>
    %41 = arith.mulf %39, %40 : vector<1x256xf32>
    %42 = arith.addf %38, %41 : vector<1x256xf32>
    %43 = vector.extract_strided_slice %37 {offsets = [0, 0], sizes = [1, 256], strides = [1, 1]} : vector<9x256xf32> to vector<1x256xf32>
    %44 = vector.extract_strided_slice %35 {offsets = [0, 0], sizes = [1, 256], strides = [1, 1]} : vector<1x290xf32> to vector<1x256xf32>
    %45 = arith.mulf %43, %44 : vector<1x256xf32>
    %46 = arith.addf %42, %45 : vector<1x256xf32>
    %47 = vector.extract_strided_slice %36 {offsets = [1, 0], sizes = [1, 256], strides = [1, 1]} : vector<9x256xf32> to vector<1x256xf32>
    %48 = vector.extract_strided_slice %34 {offsets = [0, 1], sizes = [1, 256], strides = [1, 1]} : vector<1x290xf32> to vector<1x256xf32>
    %49 = arith.mulf %47, %48 : vector<1x256xf32>
    %50 = arith.addf %46, %49 : vector<1x256xf32>
    %51 = vector.extract_strided_slice %37 {offsets = [1, 0], sizes = [1, 256], strides = [1, 1]} : vector<9x256xf32> to vector<1x256xf32>
    %52 = vector.extract_strided_slice %35 {offsets = [0, 1], sizes = [1, 256], strides = [1, 1]} : vector<1x290xf32> to vector<1x256xf32>
    %53 = arith.mulf %51, %52 : vector<1x256xf32>
    %54 = arith.addf %50, %53 : vector<1x256xf32>
    %55 = vector.extract_strided_slice %36 {offsets = [2, 0], sizes = [1, 256], strides = [1, 1]} : vector<9x256xf32> to vector<1x256xf32>
    %56 = vector.extract_strided_slice %34 {offsets = [0, 2], sizes = [1, 256], strides = [1, 1]} : vector<1x290xf32> to vector<1x256xf32>
    %57 = arith.mulf %55, %56 : vector<1x256xf32>
    %58 = arith.addf %54, %57 : vector<1x256xf32>
    %59 = vector.extract_strided_slice %37 {offsets = [2, 0], sizes = [1, 256], strides = [1, 1]} : vector<9x256xf32> to vector<1x256xf32>
    %60 = vector.extract_strided_slice %35 {offsets = [0, 2], sizes = [1, 256], strides = [1, 1]} : vector<1x290xf32> to vector<1x256xf32>
    %61 = arith.mulf %59, %60 : vector<1x256xf32>
    %62 = arith.addf %58, %61 : vector<1x256xf32>
    %63 = vector.extract_strided_slice %36 {offsets = [3, 0], sizes = [1, 256], strides = [1, 1]} : vector<9x256xf32> to vector<1x256xf32>
    %64 = vector.extract_strided_slice %34 {offsets = [0, 16], sizes = [1, 256], strides = [1, 1]} : vector<1x290xf32> to vector<1x256xf32>
    %65 = arith.mulf %63, %64 : vector<1x256xf32>
    %66 = arith.addf %62, %65 : vector<1x256xf32>
    %67 = vector.extract_strided_slice %37 {offsets = [3, 0], sizes = [1, 256], strides = [1, 1]} : vector<9x256xf32> to vector<1x256xf32>
    %68 = vector.extract_strided_slice %35 {offsets = [0, 16], sizes = [1, 256], strides = [1, 1]} : vector<1x290xf32> to vector<1x256xf32>
    %69 = arith.mulf %67, %68 : vector<1x256xf32>
    %70 = arith.addf %66, %69 : vector<1x256xf32>
    %71 = vector.extract_strided_slice %36 {offsets = [4, 0], sizes = [1, 256], strides = [1, 1]} : vector<9x256xf32> to vector<1x256xf32>
    %72 = vector.extract_strided_slice %34 {offsets = [0, 17], sizes = [1, 256], strides = [1, 1]} : vector<1x290xf32> to vector<1x256xf32>
    %73 = arith.mulf %71, %72 : vector<1x256xf32>
    %74 = arith.addf %70, %73 : vector<1x256xf32>
    %75 = vector.extract_strided_slice %37 {offsets = [4, 0], sizes = [1, 256], strides = [1, 1]} : vector<9x256xf32> to vector<1x256xf32>
    %76 = vector.extract_strided_slice %35 {offsets = [0, 17], sizes = [1, 256], strides = [1, 1]} : vector<1x290xf32> to vector<1x256xf32>
    %77 = arith.mulf %75, %76 : vector<1x256xf32>
    %78 = arith.addf %74, %77 : vector<1x256xf32>
    %79 = vector.extract_strided_slice %36 {offsets = [5, 0], sizes = [1, 256], strides = [1, 1]} : vector<9x256xf32> to vector<1x256xf32>
    %80 = vector.extract_strided_slice %34 {offsets = [0, 18], sizes = [1, 256], strides = [1, 1]} : vector<1x290xf32> to vector<1x256xf32>
    %81 = arith.mulf %79, %80 : vector<1x256xf32>
    %82 = arith.addf %78, %81 : vector<1x256xf32>
    %83 = vector.extract_strided_slice %37 {offsets = [5, 0], sizes = [1, 256], strides = [1, 1]} : vector<9x256xf32> to vector<1x256xf32>
    %84 = vector.extract_strided_slice %35 {offsets = [0, 18], sizes = [1, 256], strides = [1, 1]} : vector<1x290xf32> to vector<1x256xf32>
    %85 = arith.mulf %83, %84 : vector<1x256xf32>
    %86 = arith.addf %82, %85 : vector<1x256xf32>
    %87 = vector.extract_strided_slice %36 {offsets = [6, 0], sizes = [1, 256], strides = [1, 1]} : vector<9x256xf32> to vector<1x256xf32>
    %88 = vector.extract_strided_slice %34 {offsets = [0, 32], sizes = [1, 256], strides = [1, 1]} : vector<1x290xf32> to vector<1x256xf32>
    %89 = arith.mulf %87, %88 : vector<1x256xf32>
    %90 = arith.addf %86, %89 : vector<1x256xf32>
    %91 = vector.extract_strided_slice %37 {offsets = [6, 0], sizes = [1, 256], strides = [1, 1]} : vector<9x256xf32> to vector<1x256xf32>
    %92 = vector.extract_strided_slice %35 {offsets = [0, 32], sizes = [1, 256], strides = [1, 1]} : vector<1x290xf32> to vector<1x256xf32>
    %93 = arith.mulf %91, %92 : vector<1x256xf32>
    %94 = arith.addf %90, %93 : vector<1x256xf32>
    %95 = vector.extract_strided_slice %36 {offsets = [7, 0], sizes = [1, 256], strides = [1, 1]} : vector<9x256xf32> to vector<1x256xf32>
    %96 = vector.extract_strided_slice %34 {offsets = [0, 33], sizes = [1, 256], strides = [1, 1]} : vector<1x290xf32> to vector<1x256xf32>
    %97 = arith.mulf %95, %96 : vector<1x256xf32>
    %98 = arith.addf %94, %97 : vector<1x256xf32>
    %99 = vector.extract_strided_slice %37 {offsets = [7, 0], sizes = [1, 256], strides = [1, 1]} : vector<9x256xf32> to vector<1x256xf32>
    %100 = vector.extract_strided_slice %35 {offsets = [0, 33], sizes = [1, 256], strides = [1, 1]} : vector<1x290xf32> to vector<1x256xf32>
    %101 = arith.mulf %99, %100 : vector<1x256xf32>
    %102 = arith.addf %98, %101 : vector<1x256xf32>
    %103 = vector.extract_strided_slice %36 {offsets = [8, 0], sizes = [1, 256], strides = [1, 1]} : vector<9x256xf32> to vector<1x256xf32>
    %104 = vector.extract_strided_slice %34 {offsets = [0, 34], sizes = [1, 256], strides = [1, 1]} : vector<1x290xf32> to vector<1x256xf32>
    %105 = arith.mulf %103, %104 : vector<1x256xf32>
    %106 = arith.addf %102, %105 : vector<1x256xf32>
    %107 = vector.extract_strided_slice %37 {offsets = [8, 0], sizes = [1, 256], strides = [1, 1]} : vector<9x256xf32> to vector<1x256xf32>
    %108 = vector.extract_strided_slice %35 {offsets = [0, 34], sizes = [1, 256], strides = [1, 1]} : vector<1x290xf32> to vector<1x256xf32>
    %109 = arith.mulf %107, %108 : vector<1x256xf32>
    %110 = arith.addf %106, %109 : vector<1x256xf32>
    %111 = arith.negf %110 : vector<1x256xf32>
    %112 = math.exp %111 : vector<1x256xf32>
    %cst_24 = arith.constant 1.000000e+00 : f32
    %113 = vector.broadcast %cst_24 : f32 to vector<1x256xf32>
    %114 = arith.addf %113, %112 : vector<1x256xf32>
    %115 = arith.divf %113, %114 : vector<1x256xf32>
    %c0_25 = arith.constant 0 : index
    %c0_26 = arith.constant 0 : index
    %c0_27 = arith.constant 0 : index
    %116 = vector.load %arg6[%c0_25, %c0_26, %c0_27] : memref<1x32x256xf32, #tpu.memory_space<vmem>>, vector<1x32x256xf32>
    %117 = vector.shape_cast %116 : vector<1x32x256xf32> to vector<32x256xf32>
    %118 = vector.broadcast %22 : vector<32x1xf32> to vector<32x256xf32>
    %119 = arith.mulf %117, %118 : vector<32x256xf32>
    %120 = vector.broadcast %115 : vector<1x256xf32> to vector<32x256xf32>
    %121 = arith.mulf %119, %120 : vector<32x256xf32>
    %c0_28 = arith.constant 0 : index
    %c0_29 = arith.constant 0 : index
    %c0_30 = arith.constant 0 : index
    %122 = vector.load %arg7[%c0_28, %c0_29, %c0_30] : memref<1x32x256xf32, #tpu.memory_space<vmem>>, vector<1x32x256xf32>
    %123 = vector.shape_cast %122 : vector<1x32x256xf32> to vector<32x256xf32>
    %124 = vector.shape_cast %121 : vector<32x256xf32> to vector<1x32x256xf32>
    tpu.vector_store %arg7[%c0_28, %c0_29, %c0_30], %124 {strides = array<i32>} : memref<1x32x256xf32, #tpu.memory_space<vmem>>, vector<1x32x256xf32>,
    return
  }
  func.func @transform_0(%arg0: i32) -> (i32, i32) {
    %c0_i32 = arith.constant 0 : i32
    %c0_i32_0 = arith.constant 0 : i32
    %c0_i32_1 = arith.constant 0 : i32
    return %c0_i32, %c0_i32_0 : i32, i32
  }
  func.func @transform_1(%arg0: i32) -> (i32, i32) {
    %c0_i32 = arith.constant 0 : i32
    %c0_i32_0 = arith.constant 0 : i32
    %c0_i32_1 = arith.constant 0 : i32
    return %c0_i32, %c0_i32_0 : i32, i32
  }
  func.func @transform_2(%arg0: i32) -> (i32, i32) {
    %c0_i32 = arith.constant 0 : i32
    %c0_i32_0 = arith.constant 0 : i32
    %c0_i32_1 = arith.constant 0 : i32
    return %c0_i32, %c0_i32_0 : i32, i32
  }
  func.func @transform_3(%arg0: i32) -> (i32, i32) {
    %c0_i32 = arith.constant 0 : i32
    %c0_i32_0 = arith.constant 0 : i32
    %c0_i32_1 = arith.constant 0 : i32
    return %c0_i32, %c0_i32_0 : i32, i32
  }
  func.func @transform_4(%arg0: i32) -> (i32, i32) {
    %c0_i32 = arith.constant 0 : i32
    %c0_i32_0 = arith.constant 0 : i32
    %c0_i32_1 = arith.constant 0 : i32
    return %c0_i32, %c0_i32_0 : i32, i32
  }
  func.func @transform_5(%arg0: i32) -> (i32, i32, i32) {
    %c0_i32 = arith.constant 0 : i32
    %c0_i32_0 = arith.constant 0 : i32
    %c0_i32_1 = arith.constant 0 : i32
    return %arg0, %c0_i32, %c0_i32_0 : i32, i32, i32
  }
  func.func @transform_6(%arg0: i32) -> (i32, i32, i32) {
    %c0_i32 = arith.constant 0 : i32
    %c0_i32_0 = arith.constant 0 : i32
    %c0_i32_1 = arith.constant 0 : i32
    return %arg0, %c0_i32, %c0_i32_0 : i32, i32, i32
  }
}

</mosaic_0001>

<bundles_post_ra>
// kernel: tpu_custom_call.1
= control target key start
LH: loop header
LB: loop body
LE: loop exit
PB: predicated region body
PF: predicated region fallthrough
CT: control target
= control target key end

     0   :  { %11 = vsyncpa [#allocation3], 0  ;;  %s1894_s0 = inlined_call_operand.vmem [shape: f32[2,32], index: 0, kind: input, shape index: {}]   ;;  %s1895_s1 = inlined_call_operand.vmem [shape: f32[32,2], index: 1, kind: input, shape index: {}]   ;;  %s1896_s2 = inlined_call_operand.vmem [shape: f32[9,256], index: 2, kind: input, shape index: {}]   ;;  %s1897_s3 = inlined_call_operand.hbm [shape: f32[9,256], index: 3, kind: input, shape index: {}]   ;;  %s1898_s4 = inlined_call_operand.vmem [shape: f32[1,256], index: 4, kind: input, shape index: {}]   ;;  %s1899_s5 = inlined_call_operand.hbm [shape: f32[2,32,256], index: 5, kind: input, shape index: {}]   ;;  %s1900_s6 = inlined_call_operand.hbm [shape: f32[2,32,256], index: 6, kind: output, shape index: {}]  }
   0x1   :  { %12 = vsyncpa [#allocation6], 0 }
   0x2   :  { %14 = vsyncpa [#allocation6 + $0x1], 0 }
   0x3   :  { %15 = vsyncpa [#allocation4], 0 }
   0x4   :  { %17 = vsyncpa [#allocation4 + $0x1], 0  ;;  %s1440_s21 = smov 0   ;;  %s1442_s22 = smov 0  }
   0x5   :  { %s1444_s23 = smov 0   ;;  %s1446_s24 = smov 0  }
   0x6 LB: > { %s1461_s4 = sadd.s32 4294967295, %s1388_s24   ;;  %s1128_s25 = sadd.s32 4294967294, %s1388_s24   ;;  %s1388_s24 = sphi %s1446_s24, %s1912_s24   ;;  %s1384_s23 = sphi %s1444_s23, %s1911_s23   ;;  %s1380_s22 = sphi %s1442_s22, %s1910_s22   ;;  %s1376_s21 = sphi %s1440_s21, %s1909_s21  }
   0x7   : > { %p148_p0 = scmp.ne.s32.totalorder %s1380_s22, %s1376_s21  ;;  %p149_p1 = scmp.eq.s32.totalorder %s1461_s4, 0 }
   0x8   : > { %p172_p2 = scmp.eq.s32.totalorder %s1461_s4, 1  ;;  %p178_p3 = scmp.eq.s32.totalorder %s1128_s25, 1 }
   0x9   : > { %p1470_p4 = por %p149_p1, %p148_p0  ;;  %p1129_p5 = scmp.ge.s32.totalorder %s1388_s24, 1 }
   0xa   : > { %p1475_p6 = por %p178_p3, %p148_p0  ;;  %p185_p7 = scmp.lt.s32.totalorder %s1388_s24, 3 }
   0xb   : > { %s205_s30 = sshll.u32 %s1897_s3, 4  ;;  %s1390_s8 = smov [#allocation2]   ;;  %s206_s30 = int_to_ptr.hbm [resolvable:$true] %s205_s30 }
   0xc   : > { %p1483_p8 = pnand %p1129_p5, %p185_p7  ;;  %s207_s9 = sshll.u32 %s1390_s8, 4  ;;  %s208_s9 = int_to_ptr.vmem [resolvable:$true] %s207_s9 }
   0xd   : > { %s1493_s10 = sadd.s32 1, %s1388_s24   ;;  %s1901_s11 = smov 256  }
   0xe   : > { %p1168_p9 = pneg %p1483_p8  ;;  %s1392_s12 = smov 16  }
   0xf   : > { %s132_s13 = ssub.s32 %s1388_s24, %s1493_s10  ;;  %s135_s14 = sadd.s32 1, %s1384_s23 }
  0x10   : > { %p1169_p10 = pnand %p1168_p9, %p149_p1  ;;  %p133_p12 = scmp.eq.s32.totalorder %s132_s13, 0 }
  0x11   : > { %p142_p13 = scmp.ne.s32.totalorder %s1384_s23, %s1380_s22  ;;  %p143_p0 = scmp.eq.s32.totalorder %s1388_s24, 0 }
  0x12   : > { %1171 = dma.hbm_to_vmem [thread:$0]  (!%p1169_p10), %s206_s30, 512, %s208_s9, [#allocation3], %s1901_s11, %s1901_s11, %s1392_s12  }
  0x13   : > { %s1505_s15 = scalar_select %p133_p12, %s1384_s23, %s135_s14  }
  0x14   : > { %p1509_p3 = por %p172_p2, %p142_p13  ;;  %p1181_p5 = scmp.lt.s32.totalorder %s1388_s24, 2 }
  0x15   : > { %s224_s17 = sand.u32 1, %s1384_s23   ;;  %s1156_s18 = sshll.u32 %s1388_s24, 6 }
  0x16   : > { %p144_p7 = por %p143_p0, %p142_p13  ;;  %s1132_s19 = sshll.u32 %s224_s17, 6 }
  0x17   : > { %s233_s28 = scalar_lea.hbm %s1899_s5, %s1156_s18  ;;  %s228_s30 = scalar_lea.vmem [#allocation5], %s1132_s19 }
  0x18   : > { %s234_s29 = sshll.u32 %s233_s28, 4  ;;  %s236_s8 = sshll.u32 %s228_s30, 4  ;;  %s235_s29 = int_to_ptr.hbm [resolvable:$true] %s234_s29  ;;  %s237_s8 = int_to_ptr.vmem [resolvable:$true] %s236_s8 }
  0x19   : > { %p1519_p9 = pnand %p1181_p5, %p144_p7  ;;  %s225_s13 = scalar_lea.sflag [#allocation6], %s224_s17 }
  0x1a   : > { %s1288_s14 = sshra.s32 %s235_s29, 4  ;;  %s1295_s19 = scalar_lea.hbm %s1899_s5, 128  ;;  %s1289_s14 = int_to_ptr.hbm [resolvable:$true] %s1288_s14 }
  0x1b   : > { %s1290_s11 = scalar_lea.hbm %s1289_s14, 64  ;;  %p1292_p10 = pneg %p1519_p9 }
  0x1c   : > { %p1291_p2 = scmp.ne.s32.totalorder %s1289_s14, %s1290_s11  ;;  %p1296_p0 = scmp.lt.s32.totalorder %s1289_s14, %s1899_s5 }
  0x1d   : > { %p1297_p5 = scmp.lt.s32.totalorder %s1295_s19, %s1290_s11 }
  0x1e   : > { %p1293_p12 = pnand %p1292_p10, %p1291_p2 }
  0x1f   : > { %p1298_p7 = por %p1297_p5, %p1296_p0 }
  0x20   : > { %p1294_p13 = pneg %p1293_p12 }
  0x22   : > { %p1299_p11 = pnand %p1298_p7, %p1294_p13 }
  0x24   : > { %1302 = shalt.err (!%p1299_p11)
}
  0x25   : > { %s1907_s17 = smov 256   ;;  %248 = sbr.rel (%p1483_p8) target bundleno = 1133 (0x46d), region = 44 }
  0x26   : > { %1175 = dma.hbm_to_vmem [thread:$0]  (!%p1519_p9), %s235_s29, 1024, %s237_s8, %s225_s13, %s1907_s17, %s1907_s17, %s1392_s12  }
  0x2a   : > { %1363 = dma.done.wait (%p149_p1), [#allocation3], 512  }
  0x2b   : > { %1365 = vsyncadd (%p149_p1), [#allocation3], 4294966784  ;;  %s1543_s11 = sand.u32 1, %s1380_s22  }
  0x2c   : > { %s1137_s30 = sshll.u32 %s1543_s11, 6  ;;  %s256_s9 = scalar_lea.sflag [#allocation6], %s1543_s11 }
  0x2d   : > { %s259_s12 = scalar_lea.vmem [#allocation5], %s1137_s30 }
  0x2e   : > { %1367 = dma.done.wait (%p1470_p4), %s256_s9, 1024  }
  0x2f   : > { %1369 = vsyncadd (%p1470_p4), %s256_s9, 4294966272  ;;  %v1553_v0 = vld [vmem:[%s259_s12 + $0x30] sm:$0xff]  ;;  %v1555_v1 = vld [vmem:[%s259_s12 + $0x38] sm:$0xff]  ;;  %vm325_vm0 = vcmask 7168   ;;  %vm331_vm1 = vcmask 261120   ;;  %vm373_vm2 = vcmask 1041408  }
  0x30   : > { %v1557_v2 = vld [vmem:[%s259_s12 + $0x20] sm:$0xff]  ;;  %v318_v3 = vadd.f32 %v1555_v1, %v1553_v0  ;;  %v1561_v4 = vld [vmem:[%s259_s12 + $0x28] sm:$0xff]  ;;  %v1563_v5 = vld [vmem:[%s259_s12 + $0x10] sm:$0xff]  ;;  %v306_v9 = vmax.f32 %v1553_v0, %v1555_v1  ;;  %vm360_vm3 = vcmask 15360   ;;  %s1393_s28 = smov 127   ;;  %v1394_v43 = vmov 0  }
  0x31   : > { %v1565_v6 = vld [vmem:[%s259_s12 + $0x18] sm:$0xff]  ;;  %v315_v7 = vadd.f32 %v1561_v4, %v1557_v2  ;;  %v303_v10 = vmax.f32 %v1557_v2, %v1561_v4  ;;  %v1577_v12 = vld [vmem:[%s259_s12] sm:$0xff]  ;;  %v1579_v13 = vld [vmem:[%s259_s12 + $0x8] sm:$0xff]  ;;  %1231 = vset.pattern.permute.xlu0 %v1394_v43  ;;  %1232 = vset.pattern.permute.xlu2 %v1394_v43  ;;  %s1395_s17 = smov 17   ;;  %s1396_s9 = smov 94  }
  0x32   : > { %v312_v8 = vadd.f32 %v1565_v6, %v1563_v5  ;;  %319 = vadd.xlane.f32.xlu0 %v318_v3  ;;  %v300_v11 = vmax.f32 %v1563_v5, %v1565_v6  ;;  %v309_v14 = vadd.f32 %v1579_v13, %v1577_v12  ;;  %v297_v15 = vmax.f32 %v1577_v12, %v1579_v13  ;;  %v330_v31 = vld [vmem:[%s1894_s0] sm:$0x3]  ;;  %v357_v36 = vld [vmem:[%s1895_s1 + $0x8] sm:$0xff]  ;;  %v359_v37 = vld [vmem:[%s1895_s1 + $0x18] sm:$0xff]  ;;  %s1397_s12 = smov 126   ;;  %s1398_s26 = smov 112  }
  0x33   : > { %316 = vadd.xlane.f32.xlu1 %v315_v7  ;;  %v356_v35 = vld [vmem:[%s1895_s1] sm:$0xff]  ;;  %v358_v38 = vld [vmem:[%s1895_s1 + $0x10] sm:$0xff]  ;;  %s1399_s7 = smov 111   ;;  %s1400_s29 = smov 110  }
  0x34   : > { %313 = vadd.xlane.f32.xlu2 %v312_v8  ;;  %1233 = vset.pattern.permute.xlu1 %v1394_v43  ;;  %s1401_s8 = smov 96   ;;  %s1402_s13 = smov 95  }
  0x35   : > { %s1338_s25 = scalar_lea.hbm %s1900_s6, 128 }
  0x3a   : > { %307 = vmax.xlane.f32.xlu0 %v306_v9 }
  0x3b   : > { %304 = vmax.xlane.f32.xlu1 %v303_v10 }
  0x3c   : > { %301 = vmax.xlane.f32.xlu2 %v300_v11 }
  0x42   : > { %310 = vadd.xlane.f32.xlu0 %v309_v14 }
  0x43   : > { %298 = vmax.xlane.f32.xlu1 %v297_v15 }
  0xa5   : > { %v320_v16 = vpop.xlane.xlu0 %319 }
  0xa6   : > { %v317_v17 = vpop.xlane.xlu1 %316  ;;  %v324_v19 = vmul.f32 0.00390625, %v320_v16 }
  0xa7   : > { %v314_v18 = vpop.xlane.xlu2 %313  ;;  %v323_v21 = vmul.f32 0.00390625, %v317_v17 }
  0xa8   : > { %v322_v22 = vmul.f32 0.00390625, %v314_v18 }
  0xad   : > { %v308_v20 = vpop.xlane.xlu0 %307 }
  0xae   : > { %v305_v23 = vpop.xlane.xlu1 %304  ;;  %v329_v24 = vsel %vm325_vm0, %v308_v20, %v324_v19 }
  0xaf   : > { %347 = vmatpush.msra.mxu0 %v329_v24  ;;  %v302_v25 = vpop.xlane.xlu2 %301  ;;  %v328_v26 = vsel %vm325_vm0, %v305_v23, %v323_v21 }
  0xb0   : > { %v327_v27 = vsel %vm325_vm0, %v302_v25, %v322_v22 }
  0xb1   : > { %348 = vmatpush.msra.mxu0 %v328_v26 }
  0xb3   : > { %349 = vmatpush.msra.mxu0 %v327_v27 }
  0xb5   : > { %v311_v28 = vpop.xlane.xlu0 %310 }
  0xb6   : > { %v321_v29 = vmul.f32 0.00390625, %v311_v28  ;;  %v299_v30 = vpop.xlane.xlu1 %298 }
  0xb8   : > { %v326_v32 = vsel %vm325_vm0, %v299_v30, %v321_v29 }
  0xb9   : > { %350 = vmatpush.msra.mxu0 %v326_v32 }
  0xba   : > { %1139 = vmatmul.msk.f32.vlgmr.msra.gmra.mxu0 %vm331_vm1, %v330_v31 }
 0x137   : > { %v352_v33 = vpop.f32.mrf.mxu0 }
 0x138   : > { %v355_v34 = vmax.f32 %v352_v33, 0.0 }
 0x13a   : > { %1140 = vmatpush.msk.msra.mxu1 %vm373_vm2, %v355_v34  ;;  %1158 = vmatpush.msk.msra.mxu2 %vm373_vm2, %v355_v34 }
 0x13b   : > { %1159 = vmatpush.msk.msra.mxu3 %vm373_vm2, %v355_v34  ;;  %1141 = vmatmul.msk.f32.vlgmr.msra.gmra.mxu1 %vm360_vm3, %v356_v35 }
 0x13c   : > { %1142 = vmatmul.msk.f32.vlgmr.msra.gmra.mxu2 %vm360_vm3, %v357_v36  ;;  %1144 = vmatmul.msk.f32.vlgmr.msra.gmra.mxu3 %vm360_vm3, %v359_v37 }
 0x144   : > { %1143 = vmatmul.msk.f32.gmra.mxu2 %vm360_vm3, %v358_v38 }
 0x1b8   : > { %v394_v39 = vpop.f32.mrf.mxu1 }
 0x1b9   : > { %410 = vrot.lane.b32.xlu2 %v394_v39, %s1393_s28 }
 0x1bf   : > { %v397_v40 = vpop.f32.mrf.mxu2  ;;  %v403_v41 = vpop.f32.mrf.mxu3 }
 0x1c0   : > { %412 = vrot.lane.b32.xlu0 %v397_v40, %s1393_s28 }
 0x1c1   : > { %416 = vrot.lane.b32.xlu2 %v403_v41, %s1393_s28 }
 0x1c7   : > { %v400_v42 = vpop.f32.mrf.mxu2 }
 0x1c8   : > { %414 = vrot.lane.b32.xlu1 %v400_v42, %s1393_s28 }
 0x213   : > { %v411_v44 = vpop.permute.xlu2 %410 }
 0x214   : > { %v422_v45 = vadd.f32 %v411_v44, %v394_v39 }
 0x216   : > { %v1145_v46 = vmul.f32 -1.442695, %v422_v45 }
 0x218   : > { %1234 = vpow2.f32 %v1145_v46 }
 0x21b   : > { %v417_v49 = vpop.permute.xlu2 %416 }
 0x21c   : > { %v425_v51 = vadd.f32 %v417_v49, %v403_v41 }
 0x21e   : > { %v1235_v47 = vpop.eup %1234  ;;  %v1148_v54 = vmul.f32 -1.442695, %v425_v51 }
 0x21f   : > { %v438_v48 = vadd.f32 1.0, %v1235_v47 }
 0x221   : > { %1236 = vrcp.f32 %v438_v48  ;;  %v453_v55 = vand.u32 2147483648, %v438_v48  ;;  %v451_v57 = vand.u32 2147483647, %v438_v48  ;;  %vm447_vm5 = vweird.f32 %v438_v48 }
 0x222   : > { %1238 = vpow2.f32 %v1148_v54 }
 0x223   : > { %v454_v59 = vor.u32 1.1754944e-38, %v453_v55  ;;  %vm452_vm7 = vcmp.eq.f32.partialorder %v451_v57, 8.507059e+37 }
 0x227   : > { %v1237_v50 = vpop.eup %1236 }
 0x228   : > { %v443_v52 = vmul.f32 %v1237_v50, %v438_v48  ;;  %vm448_vm4 = vweird.f32 %v1237_v50  ;;  %v1239_v3 = vpop.eup %1238 }
 0x229   : > { %vm449_vm6 = vmor %vm447_vm5, %vm448_vm4  ;;  %v441_v8 = vadd.f32 1.0, %v1239_v3  ;;  %vm574_vm4 = vcmask 138240   ;;  %vm948_vm5 = vcmask 769024  }
 0x22a   : > { %v444_v53 = vsub.f32 1.0, %v443_v52 }
 0x22b   : > { %vm492_vm13 = vweird.f32 %v441_v8  ;;  %v498_v37 = vand.u32 2147483648, %v441_v8 }
 0x22c   : > { %v445_v56 = vmul.f32 %v1237_v50, %v444_v53 }
 0x22d   : > { %v499_v44 = vor.u32 1.1754944e-38, %v498_v37 }
 0x22e   : > { %v446_v58 = vadd.f32 %v1237_v50, %v445_v56 }
 0x230   : > { %v450_v60 = vsel %vm449_vm6, %v1237_v50, %v446_v58  ;;  %vm620_vm6 = vcmask 1039360  }
 0x231   : > { %v455_v61 = vsel %vm452_vm7, %v454_v59, %v450_v60  ;;  %vm669_vm7 = vcmask 1031168  }
 0x232   : > { %v413_v62 = vpop.permute.xlu0 %412  ;;  %504 = vperm.xlu0 %1231, %v455_v61  }
 0x233   : > { %v423_v63 = vadd.f32 %v413_v62, %v397_v40  ;;  %v496_v40 = vand.u32 2147483647, %v441_v8 }
 0x235   : > { %v1146_v7 = vmul.f32 -1.442695, %v423_v63  ;;  %vm497_vm3 = vcmp.eq.f32.partialorder %v496_v40, 8.507059e+37 }
 0x237   : > { %1240 = vpow2.f32 %v1146_v7 }
 0x238   : > { %1242 = vrcp.f32 %v441_v8 }
 0x23a   : > { %v415_v9 = vpop.permute.xlu1 %414 }
 0x23b   : > { %v424_v10 = vadd.f32 %v415_v9, %v400_v42 }
 0x23d   : > { %v1241_v11 = vpop.eup %1240  ;;  %v1147_v14 = vmul.f32 -1.442695, %v424_v10 }
 0x23e   : > { %v439_v15 = vadd.f32 1.0, %v1241_v11  ;;  %v1243_v16 = vpop.eup %1242 }
 0x23f   : > { %1244 = vpow2.f32 %v1147_v14  ;;  %v488_v18 = vmul.f32 %v1243_v16, %v441_v8  ;;  %vm493_vm12 = vweird.f32 %v1243_v16 }
 0x240   : > { %1246 = vrcp.f32 %v439_v15  ;;  %v468_v24 = vand.u32 2147483648, %v439_v15  ;;  %v466_v26 = vand.u32 2147483647, %v439_v15  ;;  %vm462_vm9 = vweird.f32 %v439_v15  ;;  %vm494_vm15 = vmor %vm492_vm13, %vm493_vm12 }
 0x241   : > { %v489_v23 = vsub.f32 1.0, %v488_v18  ;;  %vm904_vm12 = vcmask 777216  }
 0x242   : > { %v469_v30 = vor.u32 1.1754944e-38, %v468_v24  ;;  %vm467_vm11 = vcmp.eq.f32.partialorder %v466_v26, 8.507059e+37 }
 0x243   : > { %v490_v28 = vmul.f32 %v1243_v16, %v489_v23 }
 0x245   : > { %v1245_v17 = vpop.eup %1244  ;;  %v491_v35 = vadd.f32 %v1243_v16, %v490_v28 }
 0x246   : > { %v1247_v19 = vpop.eup %1246  ;;  %v440_v20 = vadd.f32 1.0, %v1245_v17 }
 0x247   : > { %v458_v21 = vmul.f32 %v1247_v19, %v439_v15  ;;  %vm463_vm8 = vweird.f32 %v1247_v19  ;;  %v495_v42 = vsel %vm494_vm15, %v1243_v16, %v491_v35 }
 0x248   : > { %1248 = vrcp.f32 %v440_v20  ;;  %vm464_vm10 = vmor %vm462_vm9, %vm463_vm8  ;;  %v483_v36 = vand.u32 2147483648, %v440_v20  ;;  %v481_v39 = vand.u32 2147483647, %v440_v20  ;;  %vm477_vm0 = vweird.f32 %v440_v20 }
 0x249   : > { %v459_v22 = vsub.f32 1.0, %v458_v21  ;;  %v500_v47 = vsel %vm497_vm3, %v499_v44, %v495_v42  ;;  %vm716_vm8 = vcmask 916480   ;;  %vm763_vm9 = vcmask 908288  }
 0x24a   : > { %v484_v43 = vor.u32 1.1754944e-38, %v483_v36  ;;  %vm482_vm2 = vcmp.eq.f32.partialorder %v481_v39, 8.507059e+37 }
 0x24b   : > { %v460_v25 = vmul.f32 %v1247_v19, %v459_v22 }
 0x24d   : > { %v461_v27 = vadd.f32 %v1247_v19, %v460_v25 }
 0x24e   : > { %v1249_v29 = vpop.eup %1248 }
 0x24f   : > { %v465_v31 = vsel %vm464_vm10, %v1247_v19, %v461_v27  ;;  %v473_v32 = vmul.f32 %v1249_v29, %v440_v20  ;;  %vm478_vm14 = vweird.f32 %v1249_v29  ;;  %vm810_vm10 = vcmask 900096  }
 0x250   : > { %v470_v33 = vsel %vm467_vm11, %v469_v30, %v465_v31  ;;  %vm479_vm1 = vmor %vm477_vm0, %vm478_vm14  ;;  %vm857_vm11 = vcmask 785408  }
 0x251   : > { %509 = vperm.xlu2 %1232, %v470_v33   ;;  %v474_v34 = vsub.f32 1.0, %v473_v32 }
 0x253   : > { %v475_v38 = vmul.f32 %v1249_v29, %v474_v34 }
 0x255   : > { %v476_v41 = vadd.f32 %v1249_v29, %v475_v38 }
 0x257   : > { %v480_v45 = vsel %vm479_vm1, %v1249_v29, %v476_v41 }
 0x258   : > { %v485_v46 = vsel %vm482_vm2, %v484_v43, %v480_v45 }
 0x259   : > { %514 = vperm.xlu1 %1233, %v485_v46   ;;  %519 = vperm.xlu2 %1232, %v500_v47  }
 0x2a4   : > { %v505_v50 = vpop.permute.xlu0 %504 }
 0x2a5   : > { %v1621_v55 = vmul.f32 %v505_v50, %v1577_v12  ;;  %v1624_v56 = vmul.f32 %v505_v50, %v1579_v13 }
 0x2ab   : > { %v510_v48 = vpop.permute.xlu2 %509 }
 0x2ac   : > { %v1609_v51 = vmul.f32 %v510_v48, %v1563_v5  ;;  %v1612_v52 = vmul.f32 %v510_v48, %v1565_v6 }
 0x2ae   : > { %v548_v5 = vadd.f32 %v1609_v51, %v1621_v55  ;;  %v557_v6 = vadd.f32 %v1612_v52, %v1624_v56 }
 0x2b3   : > { %v520_v49 = vpop.permute.xlu2 %519 }
 0x2b4   : > { %v1615_v53 = vmul.f32 %v520_v49, %v1553_v0  ;;  %v1618_v54 = vmul.f32 %v520_v49, %v1555_v1 }
 0x2b6   : > { %v531_v1 = vmax.f32 %v1609_v51, %v1615_v53  ;;  %v540_v12 = vmax.f32 %v1612_v52, %v1618_v54 }
 0x2cb   : > { %v515_v57 = vpop.permute.xlu1 %514 }
 0x2cc   : > { %v1631_v58 = vmul.f32 %v515_v57, %v1557_v2  ;;  %v1634_v0 = vmul.f32 %v515_v57, %v1561_v4 }
 0x2ce   : > { %v530_v13 = vmax.f32 %v1621_v55, %v1631_v58  ;;  %v539_v59 = vmax.f32 %v1624_v56, %v1634_v0  ;;  %v549_v60 = vadd.f32 %v548_v5, %v1631_v58  ;;  %v558_v2 = vadd.f32 %v557_v6, %v1634_v0 }
 0x2d0   : > { %v532_v61 = vmax.f32 %v530_v13, %v531_v1  ;;  %v541_v62 = vmax.f32 %v539_v59, %v540_v12  ;;  %v550_v4 = vadd.f32 %v549_v60, %v1615_v53  ;;  %v559_v63 = vadd.f32 %v558_v2, %v1618_v54 }
 0x2d2   : > { %v551_v3 = vrot.slane %v550_v4, 4  ;;  %v560_v7 = vrot.slane %v559_v63, 4  ;;  %v542_v8 = vrot.slane %v541_v62, 4  ;;  %v533_v9 = vrot.slane %v532_v61, 4 }
 0x2d4   : > { %v543_v10 = vmax.f32 %v541_v62, %v542_v8  ;;  %v534_v11 = vmax.f32 %v532_v61, %v533_v9  ;;  %v552_v14 = vadd.f32 %v551_v3, %v550_v4  ;;  %v561_v15 = vadd.f32 %v560_v7, %v559_v63 }
 0x2d6   : > { %v544_v16 = vrot.slane %v543_v10, 2  ;;  %v535_v17 = vrot.slane %v534_v11, 2  ;;  %v553_v18 = vrot.slane %v552_v14, 2  ;;  %v562_v19 = vrot.slane %v561_v15, 2 }
 0x2d8   : > { %v545_v20 = vmax.f32 %v543_v10, %v544_v16  ;;  %v536_v21 = vmax.f32 %v534_v11, %v535_v17  ;;  %v554_v22 = vadd.f32 %v553_v18, %v552_v14  ;;  %v563_v23 = vadd.f32 %v562_v19, %v561_v15 }
 0x2da   : > { %v546_v24 = vrot.slane %v545_v20, 1  ;;  %v537_v25 = vrot.slane %v536_v21, 1  ;;  %v555_v26 = vrot.slane %v554_v22, 1  ;;  %v564_v30 = vrot.slane %v563_v23, 1 }
 0x2dc   : > { %v547_v27 = vmax.f32 %v545_v20, %v546_v24  ;;  %v538_v28 = vmax.f32 %v536_v21, %v537_v25  ;;  %v556_v29 = vadd.f32 %v555_v26, %v554_v22  ;;  %v565_v32 = vadd.f32 %v564_v30, %v563_v23 }
 0x2de   : > { %572 = vrot.lane.b32.xlu0 %v547_v27, %s1395_s17  ;;  %570 = vrot.lane.b32.xlu1 %v538_v28, %s1395_s17  ;;  %v566_v31 = vmul.f32 0.03125, %v556_v29  ;;  %v567_v33 = vmul.f32 0.03125, %v565_v32 }
 0x2e0   : > { %583 = vrot.lane.b32.xlu2 %v566_v31, %s1395_s17 }
 0x2e6   : > { %585 = vrot.lane.b32.xlu1 %v567_v33, %s1395_s17 }
 0x33a   : > { %v584_v61 = vpop.permute.xlu2 %583 }
 0x33b   : > { %v1696_v4 = vsel %vm574_vm4, 0.0, %v584_v61 }
 0x33c   : > { %v637_v7 = vrot.slane %v1696_v4, 7  ;;  %v684_v10 = vrot.slane %v1696_v4, 6  ;;  %v731_v15 = vrot.slane %v1696_v4, 5  ;;  %v778_v18 = vrot.slane %v1696_v4, 4 }
 0x33d   : > { %v825_v22 = vrot.slane %v1696_v4, 3  ;;  %v872_v26 = vrot.slane %v1696_v4, 2  ;;  %v919_v30 = vrot.slane %v1696_v4, 1 }
 0x350   : > { %v573_v34 = vpop.permute.xlu0 %572  ;;  %v571_v35 = vpop.permute.xlu1 %570 }
 0x351   : > { %v580_v36 = vsel %vm574_vm4, %v573_v34, 0.0  ;;  %v1650_v37 = vsel %vm574_vm4, %v571_v35, %v573_v34  ;;  %v1653_v38 = vsel %vm574_vm4, 0.0, %v571_v35 }
 0x352   : > { %946 = vrot.lane.b32.xlu1 %v580_v36, %s1396_s9  ;;  %942 = vrot.lane.b32.xlu0 %v1653_v38, %s1396_s9  ;;  %v613_v39 = vrot.slane %v580_v36, 7  ;;  %v611_v40 = vrot.slane %v1653_v38, 7  ;;  %v612_v41 = vrot.slane %v1650_v37, 7  ;;  %v662_v42 = vrot.slane %v580_v36, 6 }
 0x353   : > { %944 = vrot.lane.b32.xlu2 %v1650_v37, %s1396_s9  ;;  %v660_v43 = vrot.slane %v1653_v38, 6  ;;  %v661_v44 = vrot.slane %v1650_v37, 6  ;;  %v709_v45 = vrot.slane %v580_v36, 5  ;;  %v707_v46 = vrot.slane %v1653_v38, 5 }
 0x354   : > { %v708_v47 = vrot.slane %v1650_v37, 5  ;;  %v756_v48 = vrot.slane %v580_v36, 4  ;;  %v754_v49 = vrot.slane %v1653_v38, 4  ;;  %v755_v50 = vrot.slane %v1650_v37, 4 }
 0x355   : > { %v803_v57 = vrot.slane %v580_v36, 3  ;;  %v801_v5 = vrot.slane %v1653_v38, 3  ;;  %v802_v6 = vrot.slane %v1650_v37, 3  ;;  %v850_v1 = vrot.slane %v580_v36, 2 }
 0x356   : > { %v848_v12 = vrot.slane %v1653_v38, 2  ;;  %v849_v13 = vrot.slane %v1650_v37, 2  ;;  %v897_v59 = vrot.slane %v580_v36, 1  ;;  %v895_v60 = vrot.slane %v1653_v38, 1 }
 0x357   : > { %v896_v2 = vrot.slane %v1650_v37, 1 }
 0x358   : > { %v586_v62 = vpop.permute.xlu1 %585 }
 0x359   : > { %v592_v63 = vsel %vm574_vm4, %v586_v62, 0.0  ;;  %v587_v3 = vsel %vm574_vm4, %v584_v61, %v586_v62 }
 0x35a   : > { %618 = vrot.lane.b32.xlu1 %v613_v39, %s1393_s28  ;;  %614 = vrot.lane.b32.xlu0 %v611_v40, %s1393_s28  ;;  %v639_v8 = vrot.slane %v592_v63, 7  ;;  %v638_v9 = vrot.slane %v587_v3, 7  ;;  %v686_v11 = vrot.slane %v592_v63, 6  ;;  %v685_v14 = vrot.slane %v587_v3, 6  ;;  %v1737_v40 = vld [vmem:[%s1896_s2] sm:$0xff] }
 0x35b   : > { %616 = vrot.lane.b32.xlu2 %v612_v41, %s1393_s28  ;;  %v733_v16 = vrot.slane %v592_v63, 5  ;;  %v732_v17 = vrot.slane %v587_v3, 5  ;;  %v780_v19 = vrot.slane %v592_v63, 4  ;;  %v779_v20 = vrot.slane %v587_v3, 4  ;;  %v1739_v41 = vld [vmem:[#allocation2 + $0x8] sm:$0xff] }
 0x35c   : > { %v827_v23 = vrot.slane %v592_v63, 3  ;;  %v826_v24 = vrot.slane %v587_v3, 3  ;;  %v874_v27 = vrot.slane %v592_v63, 2  ;;  %v873_v28 = vrot.slane %v587_v3, 2 }
 0x35d   : > { %v921_v31 = vrot.slane %v592_v63, 1  ;;  %v920_v32 = vrot.slane %v587_v3, 1 }
 0x362   : > { %667 = vrot.lane.b32.xlu1 %v662_v42, %s1397_s12  ;;  %663 = vrot.lane.b32.xlu0 %v660_v43, %s1397_s12  ;;  %v1745_v42 = vld [vmem:[#allocation2] sm:$0xff]  ;;  %v1750_v43 = vld [vmem:[%s1896_s2 + $0x8] sm:$0xff] }
 0x363   : > { %665 = vrot.lane.b32.xlu2 %v661_v44, %s1397_s12 }
 0x36a   : > { %714 = vrot.lane.b32.xlu1 %v709_v45, %s1398_s26  ;;  %710 = vrot.lane.b32.xlu0 %v707_v46, %s1398_s26  ;;  %v601_v45 = vmul.f32 %v1737_v40, %v1653_v38  ;;  %v606_v46 = vmul.f32 %v1739_v41, %v587_v3 }
 0x36b   : > { %712 = vrot.lane.b32.xlu2 %v708_v47, %s1398_s26 }
 0x372   : > { %761 = vrot.lane.b32.xlu1 %v756_v48, %s1399_s7  ;;  %757 = vrot.lane.b32.xlu0 %v754_v49, %s1399_s7 }
 0x373   : > { %759 = vrot.lane.b32.xlu2 %v755_v50, %s1399_s7 }
 0x37a   : > { %808 = vrot.lane.b32.xlu1 %v803_v57, %s1400_s29  ;;  %804 = vrot.lane.b32.xlu0 %v801_v5, %s1400_s29  ;;  %v605_v57 = vmul.f32 %v1745_v42, %v1696_v4 }
 0x37b   : > { %806 = vrot.lane.b32.xlu2 %v802_v6, %s1400_s29  ;;  %v602_v6 = vmul.f32 %v1750_v43, %v1650_v37 }
 0x382   : > { %855 = vrot.lane.b32.xlu1 %v850_v1, %s1401_s8  ;;  %851 = vrot.lane.b32.xlu0 %v848_v12, %s1401_s8  ;;  %v607_v12 = vadd.f32 %v605_v57, %v601_v45 }
 0x383   : > { %853 = vrot.lane.b32.xlu2 %v849_v13, %s1401_s8  ;;  %v608_v13 = vadd.f32 %v606_v46, %v602_v6 }
 0x38a   : > { %902 = vrot.lane.b32.xlu1 %v897_v59, %s1402_s13  ;;  %898 = vrot.lane.b32.xlu0 %v895_v60, %s1402_s13 }
 0x38b   : > { %900 = vrot.lane.b32.xlu2 %v896_v2, %s1402_s13 }
 0x392   : > { %640 = vrot.lane.b32.xlu0 %v637_v7, %s1393_s28  ;;  %644 = vrot.lane.b32.xlu1 %v639_v8, %s1393_s28 }
 0x393   : > { %642 = vrot.lane.b32.xlu2 %v638_v9, %s1393_s28 }
 0x39a   : > { %687 = vrot.lane.b32.xlu0 %v684_v10, %s1397_s12  ;;  %691 = vrot.lane.b32.xlu1 %v686_v11, %s1397_s12 }
 0x39b   : > { %689 = vrot.lane.b32.xlu2 %v685_v14, %s1397_s12  ;;  %s1157_s12 = sshll.u32 %s1461_s4, 6 }
 0x3a2   : > { %734 = vrot.lane.b32.xlu0 %v731_v15, %s1398_s26  ;;  %738 = vrot.lane.b32.xlu1 %v733_v16, %s1398_s26 }
 0x3a3   : > { %736 = vrot.lane.b32.xlu2 %v732_v17, %s1398_s26 }
 0x3aa   : > { %781 = vrot.lane.b32.xlu0 %v778_v18, %s1399_s7  ;;  %785 = vrot.lane.b32.xlu1 %v780_v19, %s1399_s7 }
 0x3ab   : > { %783 = vrot.lane.b32.xlu2 %v779_v20, %s1399_s7 }
 0x3ad   : > { %v945_v21 = vpop.permute.xlu2 %944 }
 0x3b2   : > { %828 = vrot.lane.b32.xlu0 %v825_v22, %s1400_s29  ;;  %832 = vrot.lane.b32.xlu1 %v827_v23, %s1400_s29 }
 0x3b3   : > { %830 = vrot.lane.b32.xlu2 %v826_v24, %s1400_s29  ;;  %s1039_s29 = scalar_lea.hbm %s1900_s6, %s1157_s12 }
 0x3b5   : > { %v617_v25 = vpop.permute.xlu2 %616 }
 0x3ba   : > { %875 = vrot.lane.b32.xlu0 %v872_v26, %s1401_s8  ;;  %879 = vrot.lane.b32.xlu1 %v874_v27, %s1401_s8 }
 0x3bb   : > { %877 = vrot.lane.b32.xlu2 %v873_v28, %s1401_s8  ;;  %s288_s8 = scalar_lea.vmem [#allocation7], %s1137_s30  ;;  %s1028_s30 = scalar_lea.sflag [#allocation4], %s1543_s11 }
 0x3bc   : > { %s1040_s4 = sshll.u32 %s288_s8, 4  ;;  %s1041_s4 = int_to_ptr.vmem [resolvable:$true] %s1040_s4 }
 0x3bd   : > { %v666_v29 = vpop.permute.xlu2 %665 }
 0x3c2   : > { %922 = vrot.lane.b32.xlu0 %v919_v30, %s1402_s13  ;;  %926 = vrot.lane.b32.xlu1 %v921_v31, %s1402_s13 }
 0x3c3   : > { %924 = vrot.lane.b32.xlu2 %v920_v32, %s1402_s13  ;;  %s1042_s13 = sshll.u32 %s1039_s29, 4  ;;  %s1043_s13 = int_to_ptr.hbm [resolvable:$true] %s1042_s13 }
 0x3c4   : > { %v943_v33 = vpop.permute.xlu0 %942  ;;  %v947_v34 = vpop.permute.xlu1 %946  ;;  %s1332_s14 = sshra.s32 %s1043_s13, 4  ;;  %s1333_s14 = int_to_ptr.hbm [resolvable:$true] %s1332_s14 }
 0x3c5   : > { %v1729_v35 = vsel %vm948_vm5, %v943_v33, %v945_v21  ;;  %v713_v36 = vpop.permute.xlu2 %712  ;;  %v1732_v39 = vsel %vm948_vm5, %v945_v21, %v947_v34  ;;  %s1334_s18 = scalar_lea.hbm %s1333_s14, 64  ;;  %p1339_p11 = scmp.lt.s32.totalorder %s1333_s14, %s1900_s6 }
 0x3c6   : > { %p1335_p1 = scmp.ne.s32.totalorder %s1333_s14, %s1334_s18  ;;  %p1340_p9 = scmp.lt.s32.totalorder %s1338_s25, %s1334_s18 }
 0x3c8   : > { %p1336_p4 = pnand %p1335_p1, %p1509_p3  ;;  %p1341_p2 = por %p1340_p9, %p1339_p11 }
 0x3ca   : > { %957 = vrot.lane.b32.xlu0 %v1696_v4, %s1396_s9  ;;  %961 = vrot.lane.b32.xlu1 %v592_v63, %s1396_s9  ;;  %p1337_p8 = pneg %p1336_p4 }
 0x3cb   : > { %959 = vrot.lane.b32.xlu2 %v587_v3, %s1396_s9 }
 0x3cc   : > { %v615_v44 = vpop.permute.xlu0 %614  ;;  %v619_v47 = vpop.permute.xlu1 %618  ;;  %p1342_p10 = pnand %p1341_p2, %p1337_p8 }
 0x3cd   : > { %v621_v48 = vsel %vm620_vm6, %v615_v44, %v617_v25  ;;  %v760_v49 = vpop.permute.xlu2 %759  ;;  %v622_v50 = vsel %vm620_vm6, %v617_v25, %v619_v47 }
 0x3ce   : > { %v625_v5 = vmul.f32 %v621_v48, %v1737_v40  ;;  %v626_v1 = vmul.f32 %v622_v50, %v1750_v43 }
 0x3d0   : > { %v629_v38 = vrot.slane %v625_v5, 1  ;;  %v630_v59 = vrot.slane %v626_v1, 1 }
 0x3d2   : > { %v633_v60 = vadd.f32 %v629_v38, %v607_v12  ;;  %v634_v2 = vadd.f32 %v630_v59, %v608_v13 }
 0x3d4   : > { %v664_v61 = vpop.permute.xlu0 %663  ;;  %v668_v62 = vpop.permute.xlu1 %667 }
 0x3d5   : > { %v670_v63 = vsel %vm669_vm7, %v664_v61, %v666_v29  ;;  %v671_v4 = vsel %vm669_vm7, %v666_v29, %v668_v62  ;;  %v807_v3 = vpop.permute.xlu2 %806 }
 0x3d6   : > { %v674_v32 = vmul.f32 %v670_v63, %v1737_v40  ;;  %v675_v33 = vmul.f32 %v671_v4, %v1750_v43 }
 0x3d8   : > { %v678_v47 = vrot.slane %v674_v32, 2  ;;  %v679_v48 = vrot.slane %v675_v33, 2 }
 0x3dc   : > { %v711_v7 = vpop.permute.xlu0 %710  ;;  %v715_v8 = vpop.permute.xlu1 %714 }
 0x3dd   : > { %v717_v37 = vsel %vm716_vm8, %v711_v7, %v713_v36  ;;  %v718_v9 = vsel %vm716_vm8, %v713_v36, %v715_v8  ;;  %v1767_v10 = vpop.permute.xlu2 %853 }
 0x3de   : > { %v721_v13 = vmul.f32 %v717_v37, %v1737_v40  ;;  %v722_v59 = vmul.f32 %v718_v9, %v1750_v43 }
 0x3e4   : > { %v758_v11 = vpop.permute.xlu0 %757  ;;  %v762_v14 = vpop.permute.xlu1 %761 }
 0x3e5   : > { %v764_v15 = vsel %vm763_vm9, %v758_v11, %v760_v49  ;;  %v765_v16 = vsel %vm763_vm9, %v760_v49, %v762_v14  ;;  %v1771_v17 = vpop.permute.xlu2 %900 }
 0x3e6   : > { %v768_v9 = vmul.f32 %v764_v15, %v1737_v40 }
 0x3e8   : > { %v772_v32 = vrot.slane %v768_v9, 4 }
 0x3ec   : > { %v805_v18 = vpop.permute.xlu0 %804  ;;  %v809_v19 = vpop.permute.xlu1 %808 }
 0x3ed   : > { %v1774_v20 = vsel %vm810_vm10, %v805_v18, %v807_v3  ;;  %v1777_v21 = vsel %vm810_vm10, %v807_v3, %v809_v19  ;;  %v643_v24 = vpop.permute.xlu2 %642 }
 0x3f4   : > { %v1779_v22 = vpop.permute.xlu0 %851  ;;  %v1781_v23 = vpop.permute.xlu1 %855 }
 0x3f5   : > { %v690_v27 = vpop.permute.xlu2 %689 }
 0x3fc   : > { %v1783_v25 = vpop.permute.xlu0 %898  ;;  %v1785_v26 = vpop.permute.xlu1 %902 }
 0x3fd   : > { %v737_v46 = vpop.permute.xlu2 %736 }
 0x404   : > { %v641_v28 = vpop.permute.xlu0 %640  ;;  %v645_v29 = vpop.permute.xlu1 %644 }
 0x405   : > { %v646_v30 = vsel %vm620_vm6, %v641_v28, %v643_v24  ;;  %v647_v31 = vsel %vm620_vm6, %v643_v24, %v645_v29  ;;  %v784_v8 = vpop.permute.xlu2 %783 }
 0x406   : > { %v650_v34 = vmul.f32 %v646_v30, %v1745_v42  ;;  %v651_v36 = vmul.f32 %v647_v31, %v1739_v41 }
 0x408   : > { %v654_v44 = vrot.slane %v650_v34, 1  ;;  %v655_v45 = vrot.slane %v651_v36, 1 }
 0x40a   : > { %v658_v49 = vadd.f32 %v654_v44, %v633_v60  ;;  %v659_v50 = vadd.f32 %v655_v45, %v634_v2  ;;  %v725_v60 = vrot.slane %v721_v13, 3  ;;  %v726_v2 = vrot.slane %v722_v59, 3 }
 0x40c   : > { %v688_v57 = vpop.permute.xlu0 %687  ;;  %v682_v5 = vadd.f32 %v678_v47, %v658_v49  ;;  %v683_v6 = vadd.f32 %v679_v48, %v659_v50  ;;  %v692_v1 = vpop.permute.xlu1 %691  ;;  %v816_v50 = vmul.f32 %v1777_v21, %v1750_v43 }
 0x40d   : > { %v693_v12 = vsel %vm669_vm7, %v688_v57, %v690_v27  ;;  %v694_v38 = vsel %vm669_vm7, %v690_v27, %v692_v1  ;;  %v769_v27 = vmul.f32 %v765_v16, %v1750_v43  ;;  %v831_v49 = vpop.permute.xlu2 %830  ;;  %v815_v16 = vmul.f32 %v1774_v20, %v1737_v40 }
 0x40e   : > { %v697_v61 = vmul.f32 %v693_v12, %v1745_v42  ;;  %v698_v62 = vmul.f32 %v694_v38, %v1739_v41  ;;  %v820_v38 = vrot.slane %v816_v50, 5 }
 0x40f   : > { %v773_v33 = vrot.slane %v769_v27, 4  ;;  %v819_v12 = vrot.slane %v815_v16, 5 }
 0x410   : > { %v701_v63 = vrot.slane %v697_v61, 2  ;;  %v702_v4 = vrot.slane %v698_v62, 2  ;;  %v859_v61 = vsel %vm857_vm11, %v1767_v10, %v1781_v23  ;;  %v858_v23 = vsel %vm857_vm11, %v1779_v22, %v1767_v10 }
 0x411   : > { %v905_v10 = vsel %vm904_vm12, %v1783_v25, %v1771_v17  ;;  %v906_v22 = vsel %vm904_vm12, %v1771_v17, %v1785_v26 }
 0x412   : > { %v705_v3 = vadd.f32 %v701_v63, %v682_v5  ;;  %v706_v7 = vadd.f32 %v702_v4, %v683_v6 }
 0x414   : > { %v735_v11 = vpop.permute.xlu0 %734  ;;  %v729_v14 = vadd.f32 %v725_v60, %v705_v3  ;;  %v730_v18 = vadd.f32 %v726_v2, %v706_v7  ;;  %v739_v19 = vpop.permute.xlu1 %738  ;;  %v863_v2 = vmul.f32 %v859_v61, %v1750_v43 }
 0x415   : > { %v740_v24 = vsel %vm716_vm8, %v735_v11, %v737_v46  ;;  %v741_v37 = vsel %vm716_vm8, %v737_v46, %v739_v19 }
 0x416   : > { %v744_v28 = vmul.f32 %v740_v24, %v1745_v42  ;;  %v745_v29 = vmul.f32 %v741_v37, %v1739_v41  ;;  %v862_v24 = vmul.f32 %v858_v23, %v1737_v40 }
 0x418   : > { %v748_v30 = vrot.slane %v744_v28, 3  ;;  %v749_v31 = vrot.slane %v745_v29, 3 }
 0x41a   : > { %v752_v34 = vadd.f32 %v748_v30, %v729_v14  ;;  %v753_v36 = vadd.f32 %v749_v31, %v730_v18  ;;  %v867_v14 = vrot.slane %v863_v2, 6 }
 0x41c   : > { %v782_v44 = vpop.permute.xlu0 %781  ;;  %v776_v45 = vadd.f32 %v772_v32, %v752_v34  ;;  %v777_v47 = vadd.f32 %v773_v33, %v753_v36  ;;  %v786_v48 = vpop.permute.xlu1 %785  ;;  %v866_v33 = vrot.slane %v862_v24, 6 }
 0x41d   : > { %v787_v46 = vsel %vm763_vm9, %v782_v44, %v784_v8  ;;  %v788_v15 = vsel %vm763_vm9, %v784_v8, %v786_v48  ;;  %v878_v8 = vpop.permute.xlu2 %877 }
 0x41e   : > { %v791_v57 = vmul.f32 %v787_v46, %v1745_v42  ;;  %v792_v5 = vmul.f32 %v788_v15, %v1739_v41 }
 0x420   : > { %v795_v6 = vrot.slane %v791_v57, 4  ;;  %v796_v1 = vrot.slane %v792_v5, 4 }
 0x422   : > { %v799_v13 = vadd.f32 %v795_v6, %v776_v45  ;;  %v800_v59 = vadd.f32 %v796_v1, %v777_v47  ;;  %v909_v45 = vmul.f32 %v905_v10, %v1737_v40  ;;  %v910_v47 = vmul.f32 %v906_v22, %v1750_v43  ;;  %v595_v40 = vld [vmem:[%s1896_s2 + $0x10] sm:$0x1]  ;;  %v596_v43 = vld [vmem:[%s1896_s2 + $0x18] sm:$0x1] }
 0x424   : > { %v829_v62 = vpop.permute.xlu0 %828  ;;  %v823_v20 = vadd.f32 %v819_v12, %v799_v13  ;;  %v824_v63 = vadd.f32 %v820_v38, %v800_v59  ;;  %v833_v4 = vpop.permute.xlu1 %832  ;;  %v913_v57 = vrot.slane %v909_v45, 7  ;;  %v914_v5 = vrot.slane %v910_v47, 7 }
 0x425   : > { %v834_v21 = vsel %vm810_vm10, %v829_v62, %v831_v49  ;;  %v835_v60 = vsel %vm810_vm10, %v831_v49, %v833_v4  ;;  %v925_v44 = vpop.permute.xlu2 %924  ;;  %v953_v13 = vmul.f32 %v1729_v35, %v595_v40  ;;  %v954_v59 = vmul.f32 %v1732_v39, %v596_v43 }
 0x426   : > { %v838_v3 = vmul.f32 %v834_v21, %v1745_v42  ;;  %v839_v7 = vmul.f32 %v835_v60, %v1739_v41 }
 0x428   : > { %v843_v11 = vrot.slane %v839_v7, 5  ;;  %v842_v18 = vrot.slane %v838_v3, 5 }
 0x42a   : > { %v847_v19 = vadd.f32 %v843_v11, %v824_v63  ;;  %v846_v30 = vadd.f32 %v842_v18, %v823_v20  ;;  %v600_v20 = vld [vmem:[#allocation2 + $0x18] sm:$0x1] }
 0x42c   : > { %v876_v37 = vpop.permute.xlu0 %875  ;;  %v871_v9 = vadd.f32 %v867_v14, %v847_v19  ;;  %v880_v27 = vpop.permute.xlu1 %879  ;;  %v870_v48 = vadd.f32 %v866_v33, %v846_v30 }
 0x42d   : > { %v881_v28 = vsel %vm857_vm11, %v876_v37, %v878_v8  ;;  %v882_v29 = vsel %vm857_vm11, %v878_v8, %v880_v27  ;;  %v960_v62 = vpop.permute.xlu2 %959 }
 0x42e   : > { %v885_v31 = vmul.f32 %v881_v28, %v1745_v42  ;;  %v886_v32 = vmul.f32 %v882_v29, %v1739_v41 }
 0x430   : > { %v889_v34 = vrot.slane %v885_v31, 6  ;;  %v890_v36 = vrot.slane %v886_v32, 6 }
 0x432   : > { %v893_v49 = vadd.f32 %v889_v34, %v870_v48  ;;  %v894_v46 = vadd.f32 %v890_v36, %v871_v9 }
 0x434   : > { %v923_v15 = vpop.permute.xlu0 %922  ;;  %v927_v16 = vpop.permute.xlu1 %926  ;;  %v917_v6 = vadd.f32 %v913_v57, %v893_v49  ;;  %v918_v12 = vadd.f32 %v914_v5, %v894_v46 }
 0x435   : > { %v928_v50 = vsel %vm904_vm12, %v923_v15, %v925_v44  ;;  %v929_v25 = vsel %vm904_vm12, %v925_v44, %v927_v16 }
 0x436   : > { %v932_v17 = vmul.f32 %v928_v50, %v1745_v42  ;;  %v933_v26 = vmul.f32 %v929_v25, %v1739_v41  ;;  %v599_v41 = vld [vmem:[#allocation2 + $0x10] sm:$0x1] }
 0x438   : > { %v936_v1 = vrot.slane %v932_v17, 7  ;;  %v937_v38 = vrot.slane %v933_v26, 7 }
 0x43a   : > { %v940_v61 = vadd.f32 %v936_v1, %v917_v6  ;;  %v941_v42 = vadd.f32 %v937_v38, %v918_v12 }
 0x43c   : > { %v958_v63 = vpop.permute.xlu0 %957  ;;  %v955_v4 = vadd.f32 %v953_v13, %v940_v61  ;;  %v956_v21 = vadd.f32 %v954_v59, %v941_v42  ;;  %v962_v60 = vpop.permute.xlu1 %961 }
 0x43d   : > { %v963_v2 = vsel %vm948_vm5, %v958_v63, %v960_v62  ;;  %v964_v3 = vsel %vm948_vm5, %v960_v62, %v962_v60 }
 0x43e   : > { %v967_v7 = vmul.f32 %v963_v2, %v599_v41  ;;  %v968_v8 = vmul.f32 %v964_v3, %v600_v20 }
 0x440   : > { %v969_v11 = vadd.f32 %v967_v7, %v955_v4  ;;  %v970_v23 = vadd.f32 %v968_v8, %v956_v21 }
 0x442   : > { %v1149_v35 = vmul.f32 -1.442695, %v969_v11  ;;  %v1150_v14 = vmul.f32 -1.442695, %v970_v23 }
 0x444   : > { %1250 = vpow2.f32 %v1149_v35 }
 0x445   : > { %1252 = vpow2.f32 %v1150_v14 }
 0x44a   : > { %v1251_v39 = vpop.eup %1250 }
 0x44b   : > { %v1253_v18 = vpop.eup %1252  ;;  %v977_v19 = vadd.f32 1.0, %v1251_v39 }
 0x44c   : > { %v978_v24 = vadd.f32 1.0, %v1253_v18 }
 0x44d   : > { %1254 = vrcp.f32 %v977_v19  ;;  %v990_v30 = vand.u32 2147483648, %v977_v19  ;;  %v988_v10 = vand.u32 2147483647, %v977_v19  ;;  %vm984_vm15 = vweird.f32 %v977_v19 }
 0x44e   : > { %1256 = vrcp.f32 %v978_v24  ;;  %v1005_v22 = vand.u32 2147483648, %v978_v24  ;;  %v1003_v34 = vand.u32 2147483647, %v978_v24  ;;  %vm999_vm1 = vweird.f32 %v978_v24 }
 0x44f   : > { %v991_v44 = vor.u32 1.1754944e-38, %v990_v30  ;;  %vm989_vm2 = vcmp.eq.f32.partialorder %v988_v10, 8.507059e+37 }
 0x450   : > { %v1006_v48 = vor.u32 1.1754944e-38, %v1005_v22  ;;  %vm1004_vm4 = vcmp.eq.f32.partialorder %v1003_v34, 8.507059e+37 }
 0x453   : > { %v1255_v37 = vpop.eup %1254 }
 0x454   : > { %v1257_v9 = vpop.eup %1256  ;;  %v980_v27 = vmul.f32 %v1255_v37, %v977_v19  ;;  %vm985_vm13 = vweird.f32 %v1255_v37 }
 0x455   : > { %v995_v28 = vmul.f32 %v1257_v9, %v978_v24  ;;  %vm1000_vm14 = vweird.f32 %v1257_v9  ;;  %vm986_vm0 = vmor %vm984_vm15, %vm985_vm13 }
 0x456   : > { %v981_v29 = vsub.f32 1.0, %v980_v27  ;;  %vm1001_vm3 = vmor %vm999_vm1, %vm1000_vm14 }
 0x457   : > { %v996_v31 = vsub.f32 1.0, %v995_v28 }
 0x458   : > { %v982_v32 = vmul.f32 %v1255_v37, %v981_v29 }
 0x459   : > { %v997_v33 = vmul.f32 %v1257_v9, %v996_v31 }
 0x45a   : > { %v983_v36 = vadd.f32 %v1255_v37, %v982_v32 }
 0x45b   : > { %v998_v45 = vadd.f32 %v1257_v9, %v997_v33 }
 0x45c   : > { %v987_v47 = vsel %vm986_vm0, %v1255_v37, %v983_v36 }
 0x45d   : > { %v992_v49 = vsel %vm989_vm2, %v991_v44, %v987_v47  ;;  %v1002_v46 = vsel %vm1001_vm3, %v1257_v9, %v998_v45 }
 0x45e   : > { %v1009_v15 = vperm.slane %v992_v49, 0  ;;  %v1007_v16 = vsel %vm1004_vm4, %v1006_v48, %v1002_v46 }
 0x45f   : > { %v1010_v50 = vperm.slane %v1007_v16, 0 }
 0x460   : > { %v1011_v25 = vmul.f32 %v1009_v15, %v1621_v55  ;;  %v1013_v57 = vmul.f32 %v1009_v15, %v1609_v51  ;;  %v1015_v5 = vmul.f32 %v1009_v15, %v1631_v58  ;;  %v1017_v17 = vmul.f32 %v1009_v15, %v1615_v53 }
 0x461   : > { %v1012_v26 = vmul.f32 %v1010_v50, %v1624_v56  ;;  %v1014_v40 = vmul.f32 %v1010_v50, %v1612_v52  ;;  %v1016_v51 = vmul.f32 %v1010_v50, %v1634_v0  ;;  %v1018_v55 = vmul.f32 %v1010_v50, %v1618_v54 }
 0x462   : > { %1019 = vst [vmem:[%s288_s8] sm:$0xff] %v1011_v25 }
 0x463   : > { %1021 = vst [vmem:[%s288_s8 + $0x10] sm:$0xff] %v1013_v57 }
 0x464   : > { %1023 = vst [vmem:[%s288_s8 + $0x20] sm:$0xff] %v1015_v5 }
 0x465   : > { %1025 = vst [vmem:[%s288_s8 + $0x30] sm:$0xff] %v1017_v17 }
 0x466   : > { %1020 = vst [vmem:[%s288_s8 + $0x8] sm:$0xff] %v1012_v26 }
 0x467   : > { %1022 = vst [vmem:[%s288_s8 + $0x18] sm:$0xff] %v1014_v40 }
 0x468   : > { %1024 = vst [vmem:[%s288_s8 + $0x28] sm:$0xff] %v1016_v51 }
 0x469   : > { %1026 = vst [vmem:[%s288_s8 + $0x38] sm:$0xff] %v1018_v55 }
 0x46a   : > { %1345 = shalt.err (!%p1342_p10)
}
 0x46b   : > { %s1403_s11 = smov 256   ;;  %s1404_s9 = smov 16  }
 0x46c   : > { %1166 = dma.vmem_to_hbm [thread:$0]  (%p1509_p3), %s1041_s4, 1024, %s1043_s13, %s1028_s30, %s1403_s11, %s1403_s11, %s1404_s9  }
 0x46d PF: > { %s1057_s12 = sand.u32 1, %s1376_s21   ;;  %p1908_p12 = scmp.ge.s32.totalorder %s1388_s24, 2 }
 0x46e   : > { %s1058_s26 = scalar_lea.sflag [#allocation4], %s1057_s12 }
 0x46f   : > { %p1177_p13 = pnand %p1908_p12, %p1475_p6 }
 0x471   : > { %p1178_p0 = pneg %p1177_p13 }
 0x473   : > { %1371 = dma.done.wait (%p1178_p0), %s1058_s26, 1024  }
 0x474   : > { %1373 = vsyncadd (%p1178_p0), %s1058_s26, 4294966272  ;;  %p20_p5 = scmp.ge.s32.totalorder %s1493_s10, 4   ;;  %s1909_s21 = smov %s1380_s22 }
 0x475   : > { %s1910_s22 = smov %s1384_s23  ;;  %s1911_s23 = smov %s1505_s15 }
 0x476   : > { %s1912_s24 = smov %s1493_s10  ;;  %22 = sbr.rel (!%p20_p5) target bundleno = 6 (0x6), region = 94 }
 0x47b   :  { %1064 = vsyncpa [#allocation3], 1 }
 0x47c   :  { %1066 = vsyncpa [#allocation3 + $0x1], 1 }
 0x47d   :  { %1067 = vsyncpa [#allocation6], 1 }
 0x47e   :  { %1069 = vsyncpa [#allocation6 + $0x1], 1 }
 0x47f   :  { %1070 = vsyncpa [#allocation4], 1 }
 0x480   :  { %1072 = vsyncpa [#allocation4 + $0x1], 1 }

</bundles_post_ra>
